<compile_context>
chip_gen: v7x
topology: tpu7x:2x2x1
jax: 0.10.0
libtpu: 0.0.40
codegen_flags: <defaults>
</compile_context>

<pallas_src>
import jax
import jax.numpy as jnp
from jax.experimental import pallas as pl
from jax.experimental.pallas import tpu as pltpu


def fraudnet_kernel(x_ref, w1_ref, w2_ref, b2_ref, w3_ref, b3_ref, o_ref):
    # x_ref: (8, TB) f32, row 7 is all-ones (bias fold for fc1).
    # w1_ref: (64, 8) = [W1 | b1];  w2_ref: (64, 64);  b2_ref: (64, 1)
    # w3_ref: (64, 1) column;       b3_ref: (1, 1)
    x = x_ref[...]

    # fc1 (+ folded b1) + ReLU  -> (64, TB).  bf16 MXU operands, f32 accumulation.
    h1 = jnp.dot(
        w1_ref[...].astype(jnp.bfloat16),
        x.astype(jnp.bfloat16),
        preferred_element_type=jnp.float32,
    )
    h1 = jnp.maximum(h1, 0.0)

    # fc2 + b2 + ReLU  -> (64, TB)
    h2 = jnp.dot(
        w2_ref[...].astype(jnp.bfloat16),
        h1.astype(jnp.bfloat16),
        preferred_element_type=jnp.float32,
    ) + b2_ref[...]
    h2 = jnp.maximum(h2, 0.0)

    # fc3 (M=1) off the MXU: VPU multiply + sublane (XLU) reduce -> (1, TB), then sigmoid.
    logits = jnp.sum(w3_ref[...] * h2, axis=0, keepdims=True) + b3_ref[...]
    o_ref[...] = jax.nn.sigmoid(logits).astype(o_ref.dtype)


def _round_up(n, m):
    return ((n + m - 1) // m) * m


def fraudnet_forward(x, params):
    """x: [B, 7] float32.  params in PyTorch-native layout:
    w1 (64,7), b1 (64,), w2 (64,64), b2 (64,), w3 (1,64), b3 (1,)."""
    B, F = x.shape
    assert F == 7
    w1, b1 = params["w1"], params["b1"]
    w2, b2 = params["w2"], params["b2"]
    w3, b3 = params["w3"], params["b3"]

    # Lane-dense batch tile, large enough to amortize per-step overhead (perf review: 8-16K).
    TB = min(8192, _round_up(B, 128))
    B_pad = _round_up(B, TB)

    # Wrapper-side layout plumbing (feature-major; constant-1 row 7 folds b1 into W1).
    # TODO(synk): for large-B production, have the upstream producer emit this (8, B) layout
    # directly so the transpose/pad does not cost an extra HBM round trip of x.
    x_t = jnp.concatenate([x.T, jnp.ones((1, B), x.dtype)], axis=0)      # (8, B)
    x_t = jnp.pad(x_t, ((0, 0), (0, B_pad - B)))                          # (8, B_pad)

    w1_aug = jnp.concatenate([w1, b1[:, None]], axis=1)                   # (64, 8)
    b2_col = b2[:, None]                                                  # (64, 1)
    w3_col = w3.T                                                         # (64, 1)
    b3_col = b3.reshape(1, 1)                                             # (1, 1)

    flops = 2 * B_pad * (64 * 8 + 64 * 64 + 64)
    bytes_accessed = (8 * B_pad + B_pad) * 4 + (64 * 8 + 64 * 64 + 64 + 64 + 1) * 4

    out = pl.pallas_call(
        fraudnet_kernel,
        out_shape=jax.ShapeDtypeStruct((1, B_pad), jnp.float32),
        grid=(B_pad // TB,),
        in_specs=[
            pl.BlockSpec((8, TB), lambda i: (0, i)),    # x tile, pipelined over batch
            pl.BlockSpec((64, 8), lambda i: (0, 0)),    # weights / biases: VMEM-resident
            pl.BlockSpec((64, 64), lambda i: (0, 0)),
            pl.BlockSpec((64, 1), lambda i: (0, 0)),
            pl.BlockSpec((64, 1), lambda i: (0, 0)),
            pl.BlockSpec((1, 1), lambda i: (0, 0)),
        ],
        out_specs=pl.BlockSpec((1, TB), lambda i: (0, i)),  # lane-dense output stores
        compiler_params=pltpu.CompilerParams(
            dimension_semantics=("parallel",),   # megacore sharding on v7x; no-op on v5e/v6e
            vmem_limit_bytes=32 * 1024 * 1024,   # headroom for the 8192-wide tile, all gens
        ),
        cost_estimate=pl.CostEstimate(
            flops=flops, transcendentals=B_pad, bytes_accessed=bytes_accessed
        ),
    )(x_t, w1_aug, w2, b2_col, w3_col, b3_col)

    # Back to the PyTorch output shape [B, 1].
    return out[0, :B].reshape(B, 1)


def init_params(key):
    """Deterministic init mimicking nn.Linear default (uniform +/- 1/sqrt(fan_in)).
    PyTorch-native layout: weights [out_features, in_features], biases [out_features]."""
    def linear(key, fan_in, fan_out):
        kw, kb = jax.random.split(key)
        bound = 1.0 / jnp.sqrt(fan_in)
        w = jax.random.uniform(kw, (fan_out, fan_in), jnp.float32, -bound, bound)
        b = jax.random.uniform(kb, (fan_out,), jnp.float32, -bound, bound)
        return w, b

    k1, k2, k3 = jax.random.split(key, 3)
    w1, b1 = linear(k1, 7, 64)
    w2, b2 = linear(k2, 64, 64)
    w3, b3 = linear(k3, 64, 1)
    return {"w1": w1, "b1": b1, "w2": w2, "b2": b2, "w3": w3, "b3": b3}


def reference_forward(x, params):
    """Pure-f32 reference matching the PyTorch module exactly."""
    h1 = jnp.maximum(x @ params["w1"].T + params["b1"], 0.0)
    h2 = jnp.maximum(h1 @ params["w2"].T + params["b2"], 0.0)
    return jax.nn.sigmoid(h2 @ params["w3"].T + params["b3"])


if __name__ == "__main__":
    key = jax.random.PRNGKey(0)
    kx, kp = jax.random.split(key)

    B = 8  # small batch for the correctness check; kernel scales to large B via batch tiling
    x = jax.random.normal(kx, (B, 7), jnp.float32)
    params = init_params(kp)

    out = fraudnet_forward(x, params)
    out = jax.block_until_ready(out)

    ref = reference_forward(x, params)
    assert out.shape == (B, 1), out.shape
    # bf16 MXU operands (f32 accumulation) -> compare against the f32 reference with a
    # tolerance appropriate for a sigmoid output (perf review sanctioned this trade-off).
    assert jnp.allclose(out, ref, atol=1e-2, rtol=1e-2), (out, ref)

    print("KERNEL_OK")
</pallas_src>

<mosaic_0001>
module attributes {stable_mosaic.version = 11 : i64} {
  func.func @fraudnet_kernel(%arg0: i32, %arg1: memref<8x128xf32, #tpu.memory_space<vmem>>, %arg2: memref<64x8xf32, #tpu.memory_space<vmem>>, %arg3: memref<64x64xf32, #tpu.memory_space<vmem>>, %arg4: memref<64x1xf32, #tpu.memory_space<vmem>>, %arg5: memref<64x1xf32, #tpu.memory_space<vmem>>, %arg6: memref<1x1xf32, #tpu.memory_space<vmem>>, %arg7: memref<1x128xf32, #tpu.memory_space<vmem>>) attributes {dimension_semantics = [#tpu.dimension_semantics<parallel>], iteration_bounds = array<i64: 1>, scalar_prefetch = 0 : i64, scratch_operands = 0 : i64, tpu.core_type = #tpu.core_type<tc>, window_params = [{transform_indices = @transform_0, window_bounds = array<i64: 8, 128>}, {pipeline_mode = #tpu.pipeline_mode<synchronous>, transform_indices = @transform_1, window_bounds = array<i64: 64, 8>}, {pipeline_mode = #tpu.pipeline_mode<synchronous>, transform_indices = @transform_2, window_bounds = array<i64: 64, 64>}, {pipeline_mode = #tpu.pipeline_mode<synchronous>, transform_indices = @transform_3, window_bounds = array<i64: 64, 1>}, {pipeline_mode = #tpu.pipeline_mode<synchronous>, transform_indices = @transform_4, window_bounds = array<i64: 64, 1>}, {pipeline_mode = #tpu.pipeline_mode<synchronous>, transform_indices = @transform_5, window_bounds = array<i64: 1, 1>}, {transform_indices = @transform_6, window_bounds = array<i64: 1, 128>}]} {
    %c0 = arith.constant 0 : index
    %c0_0 = arith.constant 0 : index
    %0 = vector.load %arg1[%c0, %c0_0] : memref<8x128xf32, #tpu.memory_space<vmem>>, vector<8x128xf32>
    %c0_1 = arith.constant 0 : index
    %c0_2 = arith.constant 0 : index
    %1 = vector.load %arg2[%c0_1, %c0_2] : memref<64x8xf32, #tpu.memory_space<vmem>>, vector<64x8xf32>
    %2 = arith.truncf %1 : vector<64x8xf32> to vector<64x8xbf16>
    %3 = arith.truncf %0 : vector<8x128xf32> to vector<8x128xbf16>
    %cst = arith.constant dense<0.000000e+00> : vector<64x128xf32>
    %4 = tpu.matmul %2, %3, %cst {dimension_numbers = #tpu.dot_dimension_numbers<[1], [0], [0], [1], [0, 0, 1, 1], [], []>} : vector<64x8xbf16>, vector<8x128xbf16>, vector<64x128xf32> -> vector<64x128xf32>
    %cst_3 = arith.constant 0.000000e+00 : f32
    %5 = vector.broadcast %cst_3 : f32 to vector<64x128xf32>
    %6 = arith.maximumf %4, %5 : vector<64x128xf32>
    %c0_4 = arith.constant 0 : index
    %c0_5 = arith.constant 0 : index
    %7 = vector.load %arg3[%c0_4, %c0_5] : memref<64x64xf32, #tpu.memory_space<vmem>>, vector<64x64xf32>
    %8 = arith.truncf %7 : vector<64x64xf32> to vector<64x64xbf16>
    %9 = arith.truncf %6 : vector<64x128xf32> to vector<64x128xbf16>
    %cst_6 = arith.constant dense<0.000000e+00> : vector<64x128xf32>
    %10 = tpu.matmul %8, %9, %cst_6 {dimension_numbers = #tpu.dot_dimension_numbers<[1], [0], [0], [1], [0, 0, 1, 1], [], []>} : vector<64x64xbf16>, vector<64x128xbf16>, vector<64x128xf32> -> vector<64x128xf32>
    %c0_7 = arith.constant 0 : index
    %c0_8 = arith.constant 0 : index
    %11 = vector.load %arg4[%c0_7, %c0_8] : memref<64x1xf32, #tpu.memory_space<vmem>>, vector<64x1xf32>
    %12 = vector.broadcast %11 : vector<64x1xf32> to vector<64x128xf32>
    %13 = arith.addf %10, %12 : vector<64x128xf32>
    %cst_9 = arith.constant 0.000000e+00 : f32
    %14 = vector.broadcast %cst_9 : f32 to vector<64x128xf32>
    %15 = arith.maximumf %13, %14 : vector<64x128xf32>
    %c0_10 = arith.constant 0 : index
    %c0_11 = arith.constant 0 : index
    %16 = vector.load %arg5[%c0_10, %c0_11] : memref<64x1xf32, #tpu.memory_space<vmem>>, vector<64x1xf32>
    %17 = vector.broadcast %16 : vector<64x1xf32> to vector<64x128xf32>
    %18 = arith.mulf %17, %15 : vector<64x128xf32>
    %cst_12 = arith.constant dense<0.000000e+00> : vector<128xf32>
    %19 = vector.multi_reduction <add>, %18, %cst_12 [0] : vector<64x128xf32> to vector<128xf32>
    %20 = vector.shape_cast %19 : vector<128xf32> to vector<1x128xf32>
    %c0_13 = arith.constant 0 : index
    %c0_14 = arith.constant 0 : index
    %21 = vector.load %arg6[%c0_13, %c0_14] : memref<1x1xf32, #tpu.memory_space<vmem>>, vector<1x1xf32>
    %22 = vector.broadcast %21 : vector<1x1xf32> to vector<1x128xf32>
    %23 = arith.addf %20, %22 : vector<1x128xf32>
    %24 = arith.negf %23 : vector<1x128xf32>
    %25 = math.exp %24 : vector<1x128xf32>
    %cst_15 = arith.constant 1.000000e+00 : f32
    %26 = vector.broadcast %cst_15 : f32 to vector<1x128xf32>
    %27 = arith.addf %26, %25 : vector<1x128xf32>
    %28 = arith.divf %26, %27 : vector<1x128xf32>
    %c0_16 = arith.constant 0 : index
    %c0_17 = arith.constant 0 : index
    %29 = vector.load %arg7[%c0_16, %c0_17] : memref<1x128xf32, #tpu.memory_space<vmem>>, vector<1x128xf32>
    tpu.vector_store %arg7[%c0_16, %c0_17], %28 {strides = array<i32>} : memref<1x128xf32, #tpu.memory_space<vmem>>, vector<1x128xf32>,
    return
  }
  func.func @transform_0(%arg0: i32) -> (i32, i32) {
    %c0_i32 = arith.constant 0 : i32
    %c0_i32_0 = arith.constant 0 : i32
    return %c0_i32, %arg0 : i32, i32
  }
  func.func @transform_1(%arg0: i32) -> (i32, i32) {
    %c0_i32 = arith.constant 0 : i32
    %c0_i32_0 = arith.constant 0 : i32
    %c0_i32_1 = arith.constant 0 : i32
    return %c0_i32, %c0_i32_0 : i32, i32
  }
  func.func @transform_2(%arg0: i32) -> (i32, i32) {
    %c0_i32 = arith.constant 0 : i32
    %c0_i32_0 = arith.constant 0 : i32
    %c0_i32_1 = arith.constant 0 : i32
    return %c0_i32, %c0_i32_0 : i32, i32
  }
  func.func @transform_3(%arg0: i32) -> (i32, i32) {
    %c0_i32 = arith.constant 0 : i32
    %c0_i32_0 = arith.constant 0 : i32
    %c0_i32_1 = arith.constant 0 : i32
    return %c0_i32, %c0_i32_0 : i32, i32
  }
  func.func @transform_4(%arg0: i32) -> (i32, i32) {
    %c0_i32 = arith.constant 0 : i32
    %c0_i32_0 = arith.constant 0 : i32
    %c0_i32_1 = arith.constant 0 : i32
    return %c0_i32, %c0_i32_0 : i32, i32
  }
  func.func @transform_5(%arg0: i32) -> (i32, i32) {
    %c0_i32 = arith.constant 0 : i32
    %c0_i32_0 = arith.constant 0 : i32
    %c0_i32_1 = arith.constant 0 : i32
    return %c0_i32, %c0_i32_0 : i32, i32
  }
  func.func @transform_6(%arg0: i32) -> (i32, i32) {
    %c0_i32 = arith.constant 0 : i32
    %c0_i32_0 = arith.constant 0 : i32
    return %c0_i32, %arg0 : i32, i32
  }
}

</mosaic_0001>

<bundles_post_ra>
// kernel: tpu_custom_call.1
= control target key start
LH: loop header
LB: loop body
LE: loop exit
PB: predicated region body
PF: predicated region fallthrough
CT: control target
= control target key end

     0   :  { %s630_s0 = inlined_call_operand.vmem [shape: f32[8,128], index: 0, kind: input, shape index: {}]   ;;  %s631_s1 = inlined_call_operand.vmem [shape: f32[64,8], index: 1, kind: input, shape index: {}]   ;;  %s632_s2 = inlined_call_operand.vmem [shape: f32[64,64], index: 2, kind: input, shape index: {}]   ;;  %s633_s3 = inlined_call_operand.vmem [shape: f32[64,1], index: 3, kind: input, shape index: {}]   ;;  %s634_s4 = inlined_call_operand.vmem [shape: f32[64,1], index: 4, kind: input, shape index: {}]   ;;  %s635_s5 = inlined_call_operand.<no memory space> [shape: f32[1,1], index: 5, kind: input, shape index: {}]   ;;  %s636_s6 = inlined_call_operand.hbm [shape: f32[1,128], index: 6, kind: output, shape index: {}]  }
   0x1   :  { %v11_v0 = vstv %s635_s5 }
   0x2   :  { %12 = vst [vmem:[#allocation2] sm:$0x1] %v11_v0 }
   0x3   :  { %v27_v1 = vld [vmem:[%s630_s0] sm:$0xff]  ;;  %vm54_vm0 = vcmask 1043456   ;;  %v29_v3 = vld [vmem:[%s631_s1 + $0x8] sm:$0xff]  ;;  %vm41_vm1 = vcmask 64512   ;;  %v30_v6 = vld [vmem:[%s631_s1 + $0x10] sm:$0xff] }
   0x4   :  { %v28_v2 = vld [vmem:[%s631_s1] sm:$0xff]  ;;  %v40_v4 = vpack.c.bf16 %v27_v1, %v27_v1  ;;  %v31_v7 = vld [vmem:[%s631_s1 + $0x18] sm:$0xff]  ;;  %v33_v9 = vld [vmem:[%s631_s1 + $0x28] sm:$0xff] }
   0x5   :  { %v36_v5 = vpack.c.bf16 %v29_v3, %v28_v2  ;;  %v32_v8 = vld [vmem:[%s631_s1 + $0x20] sm:$0xff]  ;;  %v37_v11 = vpack.c.bf16 %v31_v7, %v30_v6 }
   0x6   :  { %438 = vmatprep.subr.msk.bf16.mxu0 %vm54_vm0, %v40_v4  ;;  %v56_v10 = vsel %vm54_vm0, %v40_v4, 0 }
   0x7   :  { %406 = vmatprep.mubr.msk.bf16.mxu0 %vm41_vm1, %v36_v5 }
   0x8   :  { %13 = vsyncpa [#allocation4], 0  ;;  %405 = vmatpush3.bf16.msra.mxu0 %v56_v10  ;;  %v38_v12 = vpack.c.bf16 %v33_v9, %v32_v8  ;;  %v34_v13 = vld [vmem:[%s631_s1 + $0x30] sm:$0xff]  ;;  %v35_v14 = vld [vmem:[%s631_s1 + $0x38] sm:$0xff]  ;;  %vm195_vm2 = vcmask 523264   ;;  %v471_v24 = vmov 0  }
   0x9   :  { %v39_v15 = vpack.c.bf16 %v35_v14, %v34_v13  ;;  %v131_v16 = vld [vmem:[%s632_s2] sm:$0xff]  ;;  %v132_v17 = vld [vmem:[%s632_s2 + $0x8] sm:$0xff]  ;;  %v149_v23 = vld [vmem:[%s633_s3 + $0x10] sm:$0xff]  ;;  %441 = vset.pattern.permute.xlu0 %v471_v24  ;;  %442 = vset.pattern.permute.xlu1 %v471_v24 }
   0xa   :  { %v135_v18 = vld [vmem:[%s632_s2 + $0x20] sm:$0xff]  ;;  %v139_v19 = vpack.c.bf16 %v132_v17, %v131_v16  ;;  %v136_v20 = vld [vmem:[%s632_s2 + $0x28] sm:$0xff]  ;;  %167 = vperm.xlu1 %442, %v149_v23   ;;  %v150_v26 = vld [vmem:[%s633_s3 + $0x18] sm:$0xff] }
   0xb   :  { %407 = vmatmul.mubr.msk.bf16.vlgmr.msra.gmra.mrb[0].mxu0 %vm41_vm1, %v37_v11  ;;  %v141_v21 = vpack.c.bf16 %v136_v20, %v135_v18  ;;  %v147_v22 = vld [vmem:[%s633_s3] sm:$0xff]  ;;  %v148_v25 = vld [vmem:[%s633_s3 + $0x8] sm:$0xff]  ;;  %v283_v30 = vld [vmem:[%s634_s4 + $0x10] sm:$0xff] }
   0xc   :  { %410 = vmatprep.mubr.msk.bf16.mxu0 %vm41_vm1, %v38_v12  ;;  %157 = vperm.xlu0 %441, %v147_v22   ;;  %v281_v27 = vld [vmem:[%s634_s4] sm:$0xff]  ;;  %v282_v28 = vld [vmem:[%s634_s4 + $0x8] sm:$0xff]  ;;  %v284_v32 = vld [vmem:[%s634_s4 + $0x18] sm:$0xff] }
   0xd   :  { %426 = vmatprep.mubr.msk.bf16.mxu1 %vm195_vm2, %v141_v21  ;;  %v151_v29 = vld [vmem:[%s633_s3 + $0x20] sm:$0xff]  ;;  %v152_v31 = vld [vmem:[%s633_s3 + $0x28] sm:$0xff]  ;;  %v153_v33 = vld [vmem:[%s633_s3 + $0x30] sm:$0xff] }
   0xe   :  { %172 = vperm.xlu1 %442, %v150_v26   ;;  %v285_v34 = vld [vmem:[%s634_s4 + $0x20] sm:$0xff]  ;;  %v154_v35 = vld [vmem:[%s633_s3 + $0x38] sm:$0xff]  ;;  %v286_v36 = vld [vmem:[%s634_s4 + $0x28] sm:$0xff] }
   0xf   :  { %v287_v37 = vld [vmem:[%s634_s4 + $0x30] sm:$0xff]  ;;  %v288_v38 = vld [vmem:[%s634_s4 + $0x38] sm:$0xff]  ;;  %v350_v39 = vld [vmem:[#allocation2] sm:$0x1] }
  0x10   :  { %162 = vperm.xlu0 %441, %v148_v25   ;;  %v133_v60 = vld [vmem:[%s632_s2 + $0x10] sm:$0xff]  ;;  %v134_v61 = vld [vmem:[%s632_s2 + $0x18] sm:$0xff] }
  0x11   :  { %v137_v62 = vld [vmem:[%s632_s2 + $0x30] sm:$0xff]  ;;  %v138_v63 = vld [vmem:[%s632_s2 + $0x38] sm:$0xff]  ;;  %v140_v0 = vpack.c.bf16 %v134_v61, %v133_v60  ;;  %s472_s2 = smov [#allocation3]  }
  0x12   :  { %296 = vperm.xlu1 %442, %v282_v28   ;;  %v142_v1 = vpack.c.bf16 %v138_v63, %v137_v62  ;;  %s374_s0 = sshll.u32 %s472_s2, 4  ;;  %s375_s0 = int_to_ptr.vmem [resolvable:$true] %s374_s0 }
  0x13   :  { %411 = vmatmul.mubr.msk.bf16.gmra.mrb[4].mxu0 %vm41_vm1, %v39_v15  ;;  %s447_s8 = scalar_lea.vmem %s375_s0, 16  ;;  %s451_s9 = scalar_lea.vmem %s375_s0, 32 }
  0x14   :  { %422 = vmatprep.mubr.msk.bf16.mxu0 %vm195_vm2, %v139_v19  ;;  %291 = vperm.xlu0 %441, %v281_v27   ;;  %p448_p0 = scmp.ne.s32.totalorder %s375_s0, %s447_s8  ;;  %p452_p1 = scmp.lt.s32.totalorder %s375_s0, %s375_s0 }
  0x15   :  { %p453_p2 = scmp.lt.s32.totalorder %s451_s9, %s447_s8 }
  0x16   :  { %301 = vperm.xlu1 %442, %v283_v30  }
  0x17   :  { %p454_p3 = por %p453_p2, %p452_p1 }
  0x18   :  { %177 = vperm.xlu0 %441, %v151_v29  }
  0x19   :  { %p455_p4 = pnand %p454_p3, %p448_p0 }
  0x1a   :  { %306 = vperm.xlu1 %442, %v284_v32  }
  0x1c   :  { %182 = vperm.xlu0 %441, %v152_v31  }
  0x1e   :  { %311 = vperm.xlu1 %442, %v285_v34  }
  0x20   :  { %187 = vperm.xlu0 %441, %v153_v33  }
  0x22   :  { %316 = vperm.xlu1 %442, %v286_v36  }
  0x24   :  { %192 = vperm.xlu0 %441, %v154_v35  }
  0x26   :  { %326 = vperm.xlu1 %442, %v288_v38  }
  0x28   :  { %321 = vperm.xlu0 %441, %v287_v37  }
  0x2c   :  { %353 = vperm.xlu0 %441, %v350_v39  }
  0x89   :  { %v168_v3 = vpop.permute.xlu1 %167 }
  0x8b   :  { %v158_v2 = vpop.permute.xlu0 %157 }
  0x8d   :  { %v173_v5 = vpop.permute.xlu1 %172 }
  0x8f   :  { %v163_v4 = vpop.permute.xlu0 %162 }
  0x91   :  { %v297_v7 = vpop.permute.xlu1 %296 }
  0x93   :  { %v292_v6 = vpop.permute.xlu0 %291 }
  0x95   :  { %v302_v9 = vpop.permute.xlu1 %301 }
  0x97   :  { %v178_v8 = vpop.permute.xlu0 %177 }
  0x99   :  { %v307_v11 = vpop.permute.xlu1 %306 }
  0x9b   :  { %v183_v10 = vpop.permute.xlu0 %182 }
  0x9d   :  { %v312_v29 = vpop.permute.xlu1 %311 }
  0x9f   :  { %v188_v25 = vpop.permute.xlu0 %187 }
  0xa3   :  { %v193_v38 = vpop.permute.xlu0 %192 }
  0xde   :  { %v408_v40 = vpop.f32.mrb[0].mxu0 }
  0xdf   :  { %v92_v41 = vpop.f32.mrb[1].mxu0  ;;  %v125_v43 = vmax.f32 %v408_v40, 0.0 }
  0xe0   :  { %v409_v42 = vpop.f32.mrb[2].mxu0  ;;  %v123_v46 = vmax.f32 %v92_v41, 0.0 }
  0xe1   :  { %v126_v44 = vmax.f32 %v409_v42, 0.0  ;;  %v95_v45 = vpop.f32.mrb[3].mxu0 }
  0xe2   :  { %v124_v47 = vmax.f32 %v95_v45, 0.0 }
  0xe3   :  { %v144_v48 = vpack.c.bf16 %v126_v44, %v125_v43  ;;  %v317_v43 = vpop.permute.xlu1 %316 }
  0xe4   :  { %v143_v49 = vpack.c.bf16 %v124_v47, %v123_v46 }
  0xe6   :  { %v412_v50 = vpop.f32.mrb[4].mxu0  ;;  %414 = vmatprep.subr.bf16.mxu0 %v143_v49  ;;  %430 = vmatprep.subr.bf16.mxu1 %v143_v49 }
  0xe7   :  { %v108_v51 = vpop.f32.mrb[5].mxu0  ;;  %415 = vmatpush3.bf16.msra.mxu0 %v143_v49  ;;  %434 = vmatpush3.bf16.msra.mxu1 %v143_v49  ;;  %v129_v53 = vmax.f32 %v412_v50, 0.0  ;;  %v322_v50 = vpop.permute.xlu0 %321 }
  0xe8   :  { %v413_v52 = vpop.f32.mrb[6].mxu0  ;;  %416 = vmatprep.subr.bf16.mxu0 %v144_v48  ;;  %431 = vmatprep.subr.bf16.mxu1 %v144_v48  ;;  %v127_v56 = vmax.f32 %v108_v51, 0.0 }
  0xe9   :  { %v130_v54 = vmax.f32 %v413_v52, 0.0  ;;  %v111_v55 = vpop.f32.mrb[7].mxu0 }
  0xea   :  { %v128_v57 = vmax.f32 %v111_v55, 0.0 }
  0xeb   :  { %v146_v58 = vpack.c.bf16 %v130_v54, %v129_v53  ;;  %417 = vmatpush3.bf16.msra.mxu0 %v144_v48  ;;  %435 = vmatpush3.bf16.msra.mxu1 %v144_v48  ;;  %v327_v53 = vpop.permute.xlu1 %326 }
  0xec   :  { %v145_v59 = vpack.c.bf16 %v128_v57, %v127_v56  ;;  %v356_v56 = vlaneseq }
  0xee   :  { %418 = vmatprep.subr.bf16.mxu0 %v145_v59  ;;  %432 = vmatprep.subr.bf16.mxu1 %v145_v59 }
  0xef   :  { %419 = vmatpush3.bf16.msra.mxu0 %v145_v59  ;;  %436 = vmatpush3.bf16.msra.mxu1 %v145_v59  ;;  %v357_v59 = vshrl.u32 %v356_v56, 7 }
  0xf0   :  { %420 = vmatprep.subr.bf16.mxu0 %v146_v58  ;;  %433 = vmatprep.subr.bf16.mxu1 %v146_v58 }
  0xf1   :  { %v358_v62 = vsub.s32 0, %v357_v59 }
  0xf3   :  { %421 = vmatpush3.bf16.msra.mxu0 %v146_v58  ;;  %437 = vmatpush3.bf16.msra.mxu1 %v146_v58 }
  0xf6   :  { %423 = vmatmul.mubr.msk.bf16.vlgmr.msra.gmra.mrb[8].mxu0 %vm195_vm2, %v140_v0  ;;  %427 = vmatmul.mubr.msk.bf16.vlgmr.msra.gmra.mrb[0].mxu1 %vm195_vm2, %v142_v1  ;;  %v354_v0 = vpop.permute.xlu0 %353 }
 0x1c9   :  { %v424_v12 = vpop.f32.mrb[8].mxu0  ;;  %v428_v13 = vpop.f32.mrb[0].mxu1 }
 0x1ca   :  { %v242_v14 = vpop.f32.mrb[9].mxu0  ;;  %v258_v15 = vpop.f32.mrb[1].mxu1  ;;  %v251_v16 = vadd.f32 %v424_v12, %v168_v3  ;;  %v267_v35 = vadd.f32 %v428_v13, %v188_v25 }
 0x1cb   :  { %v243_v17 = vadd.f32 %v242_v14, %v158_v2  ;;  %v425_v18 = vpop.f32.mrb[10].mxu0  ;;  %v429_v19 = vpop.f32.mrb[2].mxu1  ;;  %v259_v27 = vadd.f32 %v258_v15, %v178_v8  ;;  %v359_v2 = vrot.slane %v354_v0, %v358_v62 }
 0x1cc   :  { %v245_v20 = vpop.f32.mrb[11].mxu0  ;;  %v261_v21 = vpop.f32.mrb[3].mxu1  ;;  %v254_v23 = vadd.f32 %v425_v18, %v173_v5  ;;  %v275_v26 = vmax.f32 %v251_v16, 0.0  ;;  %v270_v40 = vadd.f32 %v429_v19, %v193_v38  ;;  %v279_v44 = vmax.f32 %v267_v35, 0.0 }
 0x1cd   :  { %v273_v22 = vmax.f32 %v243_v17, 0.0  ;;  %v246_v24 = vadd.f32 %v245_v20, %v163_v4  ;;  %v262_v33 = vadd.f32 %v261_v21, %v183_v10  ;;  %v277_v36 = vmax.f32 %v259_v27, 0.0 }
 0x1ce   :  { %v276_v31 = vmax.f32 %v254_v23, 0.0  ;;  %v331_v34 = vmul.f32 %v302_v9, %v275_v26  ;;  %v280_v47 = vmax.f32 %v270_v40, 0.0  ;;  %v335_v51 = vmul.f32 %v322_v50, %v279_v44 }
 0x1cf   :  { %v274_v28 = vmax.f32 %v246_v24, 0.0  ;;  %v329_v30 = vmul.f32 %v292_v6, %v273_v22  ;;  %v278_v42 = vmax.f32 %v262_v33, 0.0  ;;  %v333_v45 = vmul.f32 %v312_v29, %v277_v36 }
 0x1d0   :  { %v332_v39 = vmul.f32 %v307_v11, %v276_v31  ;;  %v336_v54 = vmul.f32 %v327_v53, %v280_v47 }
 0x1d1   :  { %v330_v32 = vmul.f32 %v297_v7, %v274_v28  ;;  %v334_v48 = vmul.f32 %v317_v43, %v278_v42 }
 0x1d3   :  { %v337_v37 = vadd.f32 %v330_v32, %v329_v30 }
 0x1d5   :  { %v338_v41 = vadd.f32 %v337_v37, %v331_v34 }
 0x1d7   :  { %v339_v46 = vadd.f32 %v338_v41, %v332_v39 }
 0x1d9   :  { %v340_v49 = vadd.f32 %v339_v46, %v333_v45 }
 0x1db   :  { %v341_v52 = vadd.f32 %v340_v49, %v334_v48 }
 0x1dd   :  { %v342_v55 = vadd.f32 %v341_v52, %v335_v51 }
 0x1df   :  { %v343_v57 = vadd.f32 %v342_v55, %v336_v54 }
 0x1e1   :  { %v344_v58 = vrot.slane %v343_v57, 4 }
 0x1e3   :  { %v345_v60 = vadd.f32 %v344_v58, %v343_v57 }
 0x1e5   :  { %v346_v61 = vrot.slane %v345_v60, 2 }
 0x1e7   :  { %v347_v63 = vadd.f32 %v346_v61, %v345_v60 }
 0x1e9   :  { %v348_v1 = vrot.slane %v347_v63, 1 }
 0x1eb   :  { %v349_v3 = vadd.f32 %v348_v1, %v347_v63 }
 0x1ed   :  { %v360_v4 = vadd.f32 %v359_v2, %v349_v3 }
 0x1ef   :  { %v390_v5 = vmul.f32 -1.442695, %v360_v4 }
 0x1f1   :  { %443 = vpow2.f32 %v390_v5 }
 0x1fb   :  { %v444_v6 = vpop.eup %443 }
 0x1fc   :  { %v364_v7 = vadd.f32 1.0, %v444_v6 }
 0x1fe   :  { %445 = vrcp.f32 %v364_v7 }
 0x208   :  { %v446_v8 = vpop.eup %445 }
 0x209   :  { %367 = vst [vmem:[#allocation3] sm:$0x1] %v446_v8 }
 0x20a   :  { %458 = shalt.err (!%p455_p4)
}
 0x20b   :  { %s459_s12 = scalar_lea.hbm %s636_s6, 16 }
 0x20c   :  { %p460_p5 = scmp.ne.s32.totalorder %s636_s6, %s459_s12  ;;  %p463_p6 = scmp.lt.u32.totalorder %s459_s12, %s636_s6 }
 0x20e   :  { %p465_p7 = pnand %p463_p6, %p460_p5 }
 0x210   :  { %468 = shalt.err (!%p465_p7)
}
 0x211   :  { %377 = dma.vmem_to_hbm [thread:$0]  %s375_s0, 16, %s636_s6, [#allocation4]  }
 0x212   :  { %469 = dma.done.wait [#allocation4], 16  }
 0x213   :  { %470 = vsyncadd [#allocation4], 4294967280 }
 0x214   :  { %381 = vsyncpa [#allocation4], 1 }

</bundles_post_ra>
